<compile_context>
chip_gen: v7x
topology: tpu7x:2x2x1
jax: 0.10.0
libtpu: 0.0.40
codegen_flags: <defaults>
</compile_context>

<pallas_src>
import functools

import jax
import jax.numpy as jnp
import numpy as np
from jax import lax
from jax.experimental import pallas as pl
from jax.experimental.pallas import tpu as pltpu


# ---------------------------------------------------------------------------
# Kernel 1: streaming global-average-pool partial sums.
# ---------------------------------------------------------------------------
def _accumulate_lane_partials(x_ref, acc_ref, *, nlb, masked, hw, offset):
    """acc[(Bt, C, 128)] += lane-parallel partial sums of the current tile."""
    part = acc_ref[...]
    if masked:
        base = lax.broadcasted_iota(
            jnp.int32, (acc_ref.shape[0], acc_ref.shape[1], 128), 2) + offset
    for j in range(nlb):
        chunk = x_ref[:, :, j * 128:(j + 1) * 128].astype(jnp.float32)
        if masked:
            # OOB lanes of an unpadded boundary tile are unspecified -> select.
            chunk = jnp.where(base + (j * 128) < hw, chunk, 0.0)
        part = part + chunk
    acc_ref[...] = part


def _pool_kernel(x_ref, part_ref, acc_ref, *, hw, tile, s_per_split,
                 use_lane_partials, needs_mask):
    s = pl.program_id(2)

    @pl.when(s == 0)
    def _():
        acc_ref[...] = jnp.zeros_like(acc_ref)

    if not use_lane_partials:
        # Tiny-spatial path (HW < 128): single full-extent tile, no masking.
        acc_ref[...] += jnp.sum(x_ref[...].astype(jnp.float32), axis=-1)
    else:
        nlb = tile // 128
        if needs_mask:
            p = pl.program_id(0)
            offset = (p * s_per_split + s) * tile   # unclamped element offset
            is_ragged = offset + tile > hw

            @pl.when(jnp.logical_not(is_ragged))
            def _():
                _accumulate_lane_partials(x_ref, acc_ref, nlb=nlb,
                                          masked=False, hw=hw, offset=0)

            @pl.when(is_ragged)
            def _():
                # Boundary tile or the duplicated (clamped) excess tile of the
                # second split: mask invalid lanes to zero before accumulating.
                _accumulate_lane_partials(x_ref, acc_ref, nlb=nlb,
                                          masked=True, hw=hw, offset=offset)
        else:
            _accumulate_lane_partials(x_ref, acc_ref, nlb=nlb,
                                      masked=False, hw=hw, offset=0)

    @pl.when(s == pl.num_programs(2) - 1)
    def _():
        if use_lane_partials:
            part_ref[0] = jnp.sum(acc_ref[...], axis=-1)   # single XLU reduce
        else:
            part_ref[0] = acc_ref[...]


# ---------------------------------------------------------------------------
# Kernel 2: combine split partials, divide by true H*W, tiny 2-layer MLP.
# ---------------------------------------------------------------------------
def _finalize_kernel(part_ref, w1_ref, b1_ref, w2_ref, b2_ref, o_ref, *, inv_hw):
    pooled = jnp.sum(part_ref[...], axis=0) * inv_hw               # (B, C) f32
    h = jnp.dot(pooled, w1_ref[...],
                preferred_element_type=jnp.float32) + b1_ref[...]
    h = jnp.maximum(h, 0.0)
    out = jnp.dot(h, w2_ref[...],
                  preferred_element_type=jnp.float32) + b2_ref[...]
    o_ref[...] = out.astype(o_ref.dtype)


# ---------------------------------------------------------------------------
# Wrapper.
# ---------------------------------------------------------------------------
def channel_attention(x, w1, b1, w2, b2, *, per_buffer_budget_bytes=None):
    """x: (B, C, H, W). w1: (C, Ch), b1: (Ch,), w2: (Ch, C), b2: (C,).

    PyTorch nn.Linear weights are (out, in); pass them pre-transposed (in, out).
    """
    B, C, H, W = x.shape
    HW = H * W
    elem = jnp.dtype(x.dtype).itemsize
    x_flat = x.reshape(B, C, HW)

    # ---- per-generation VMEM sizing ---------------------------------------
    try:
        vmem_capacity = int(pltpu.get_tpu_info().vmem_capacity_bytes)
    except Exception:
        vmem_capacity = 64 << 20            # conservative (v7x-sized) fallback
    if per_buffer_budget_bytes is None:
        per_buffer_budget_bytes = max(2 << 20, min(20 << 20, vmem_capacity // 6))

    # ---- batch-block size Bt (== B or a multiple of 8) --------------------
    if B % 16 == 0:
        Bt = B // 2
    elif B > 8 and B % 8 == 0:
        Bt = 8
    else:
        Bt = B
    # Harden against VMEM blowups: the minimal 128-lane tile and the f32 lane
    # accumulator must fit the per-buffer budget; shrink Bt instead of T.
    while Bt % 16 == 0 and Bt > 8 and Bt * C * 128 * 4 > per_buffer_budget_bytes:
        Bt //= 2
    batch_blocks = B // Bt

    # ---- spatial tile size T (no HBM padding; ragged tail masked in-kernel)
    if HW < 128:
        T = HW                              # single full-extent tile
        use_lane_partials = False
    else:
        lanes_budget = per_buffer_budget_bytes // max(1, Bt * C * elem)
        T = max(128, min(8192, (lanes_budget // 128) * 128, (HW // 128) * 128))
        use_lane_partials = True
    total_blocks = pl.cdiv(HW, T)

    # ---- split the reduction across TensorCores when batch cannot ---------
    P = 2 if (batch_blocks == 1 and total_blocks >= 2) else 1
    s_per_split = pl.cdiv(total_blocks, P)
    needs_mask = (HW % T != 0) or (P * s_per_split != total_blocks)

    grid = (P, batch_blocks, s_per_split)

    def x_index_map(p, b, s):
        # Clamp so the duplicated trailing step of the second split stays in
        # bounds; the kernel masks its contribution to zero.
        return (b, 0, jnp.minimum(p * s_per_split + s, total_blocks - 1))

    acc_shape = (Bt, C, 128) if use_lane_partials else (Bt, C)

    kernel = functools.partial(
        _pool_kernel, hw=HW, tile=T, s_per_split=s_per_split,
        use_lane_partials=use_lane_partials, needs_mask=needs_mask)

    x_buf = Bt * C * T * elem
    acc_buf = (Bt * C * (128 if use_lane_partials else 1)) * 4
    out_buf = Bt * C * 4
    needed = 2 * x_buf + acc_buf + 2 * out_buf + (2 << 20)
    vmem_limit = int(min(max(needed, 32 << 20), int(0.9 * vmem_capacity)))

    partials = pl.pallas_call(
        kernel,
        out_shape=jax.ShapeDtypeStruct((P, B, C), jnp.float32),
        grid_spec=pltpu.PrefetchScalarGridSpec(
            num_scalar_prefetch=0,
            grid=grid,
            in_specs=[pl.BlockSpec((Bt, C, T), x_index_map)],
            out_specs=pl.BlockSpec((1, Bt, C), lambda p, b, s: (p, b, 0)),
            scratch_shapes=[pltpu.VMEM(acc_shape, jnp.float32)],
        ),
        compiler_params=pltpu.CompilerParams(
            dimension_semantics=("parallel", "parallel", "arbitrary"),
            vmem_limit_bytes=vmem_limit,
        ),
        cost_estimate=pl.CostEstimate(
            flops=B * C * HW,
            transcendentals=0,
            bytes_accessed=B * C * HW * elem + P * B * C * 4,
        ),
    )(x_flat)

    out = pl.pallas_call(
        functools.partial(_finalize_kernel, inv_hw=1.0 / float(HW)),
        out_shape=jax.ShapeDtypeStruct((B, C), x.dtype),
    )(partials, w1, b1.reshape(1, -1), w2, b2.reshape(1, -1))

    return out.reshape(B, C, 1, 1)


# ---------------------------------------------------------------------------
# Reference + tests.
# ---------------------------------------------------------------------------
def reference(x, w1, b1, w2, b2):
    B, C = x.shape[:2]
    pooled = jnp.mean(x.astype(jnp.float32), axis=(2, 3))
    h = jnp.maximum(pooled @ w1 + b1, 0.0)
    out = h @ w2 + b2
    return out.reshape(B, C, 1, 1).astype(x.dtype)


def _run_case(key, B, C, H, W, reduction_ratio=16, dtype=jnp.float32,
              per_buffer_budget_bytes=None, rtol=1e-5, atol=1e-5):
    Ch = max(1, C // reduction_ratio)
    kx, k1, kb1, k2, kb2 = jax.random.split(key, 5)

    x = jax.random.normal(kx, (B, C, H, W), dtype=jnp.float32).astype(dtype)
    w1 = jax.random.normal(k1, (C, Ch), dtype=jnp.float32) * 0.1
    b1 = jax.random.normal(kb1, (Ch,), dtype=jnp.float32) * 0.1
    w2 = jax.random.normal(k2, (Ch, C), dtype=jnp.float32) * 0.1
    b2 = jax.random.normal(kb2, (C,), dtype=jnp.float32) * 0.1

    out = jax.block_until_ready(
        channel_attention(x, w1, b1, w2, b2,
                          per_buffer_budget_bytes=per_buffer_budget_bytes))
    ref = reference(x, w1, b1, w2, b2)

    np.testing.assert_allclose(
        np.asarray(out, dtype=np.float32),
        np.asarray(ref, dtype=np.float32),
        rtol=rtol, atol=atol,
    )
    assert out.shape == (B, C, 1, 1)


if __name__ == "__main__":
    keys = jax.random.split(jax.random.PRNGKey(0), 5)

    # Module-consistent small shape (reduction_ratio=16 -> hidden=4).
    _run_case(keys[0], B=2, C=64, H=16, W=16)

    # Ragged spatial extent (HW=3136): 2-way TensorCore split + in-kernel
    # tail mask, no HBM padding copy.
    _run_case(keys[1], B=2, C=64, H=56, W=56)

    # Forced-small tile budget: multi-step streaming per split plus the
    # clamped/duplicated excess tile of the second split (fully masked).
    _run_case(keys[2], B=2, C=64, H=56, W=56, per_buffer_budget_bytes=128 * 1024)

    # Tiny spatial path (HW < 128) with batch blocking (Bt=8, 2 batch blocks).
    _run_case(keys[3], B=16, C=64, H=8, W=8)

    # bf16 activations (f32 accumulation inside the kernel).
    _run_case(keys[4], B=2, C=64, H=32, W=32, dtype=jnp.bfloat16,
              rtol=2e-2, atol=2e-2)

    print("KERNEL_OK")
</pallas_src>

<mosaic_0001>
module attributes {stable_mosaic.version = 11 : i64} {
  func.func @_pool_kernel(%arg0: i32, %arg1: i32, %arg2: i32, %arg3: memref<2x64x256xf32, #tpu.memory_space<vmem>>, %arg4: memref<1x2x64xf32, #tpu.memory_space<vmem>>, %arg5: memref<2x64x128xf32, #tpu.memory_space<vmem>>) attributes {dimension_semantics = [#tpu.dimension_semantics<parallel>, #tpu.dimension_semantics<parallel>, #tpu.dimension_semantics<arbitrary>], iteration_bounds = array<i64: 1, 1, 1>, scalar_prefetch = 0 : i64, scratch_operands = 1 : i64, tpu.core_type = #tpu.core_type<tc>, window_params = [{transform_indices = @transform_0, window_bounds = array<i64: 2, 64, 256>}, {transform_indices = @transform_1, window_bounds = array<i64: 1, 2, 64>}]} {
    %c0_i32 = arith.constant 0 : i32
    %0 = arith.cmpi eq, %arg2, %c0_i32 : i32
    %1 = arith.extui %0 : i1 to i32
    %c0_i32_0 = arith.constant 0 : i32
    %2 = arith.cmpi ne, %1, %c0_i32_0 : i32
    scf.if %2 {
      %cst = arith.constant 0.000000e+00 : f32
      %12 = vector.broadcast %cst : f32 to vector<2x64x128xf32>
      %c0_13 = arith.constant 0 : index
      %c0_14 = arith.constant 0 : index
      %c0_15 = arith.constant 0 : index
      %13 = vector.load %arg5[%c0_13, %c0_14, %c0_15] : memref<2x64x128xf32, #tpu.memory_space<vmem>>, vector<2x64x128xf32>
      tpu.vector_store %arg5[%c0_13, %c0_14, %c0_15], %12 {strides = array<i32>} : memref<2x64x128xf32, #tpu.memory_space<vmem>>, vector<2x64x128xf32>,
    } else {
    }
    %c0 = arith.constant 0 : index
    %c0_1 = arith.constant 0 : index
    %c0_2 = arith.constant 0 : index
    %3 = vector.load %arg5[%c0, %c0_1, %c0_2] : memref<2x64x128xf32, #tpu.memory_space<vmem>>, vector<2x64x128xf32>
    %c0_3 = arith.constant 0 : index
    %c0_4 = arith.constant 0 : index
    %c0_5 = arith.constant 0 : index
    %4 = vector.load %arg3[%c0_3, %c0_4, %c0_5] : memref<2x64x256xf32, #tpu.memory_space<vmem>>, vector<2x64x128xf32>
    %5 = arith.addf %3, %4 : vector<2x64x128xf32>
    %c0_6 = arith.constant 0 : index
    %c0_7 = arith.constant 0 : index
    %c128 = arith.constant 128 : index
    %6 = vector.load %arg3[%c0_6, %c0_7, %c128] : memref<2x64x256xf32, #tpu.memory_space<vmem>>, vector<2x64x128xf32>
    %7 = arith.addf %5, %6 : vector<2x64x128xf32>
    %c0_8 = arith.constant 0 : index
    %c0_9 = arith.constant 0 : index
    %c0_10 = arith.constant 0 : index
    %8 = vector.load %arg5[%c0_8, %c0_9, %c0_10] : memref<2x64x128xf32, #tpu.memory_space<vmem>>, vector<2x64x128xf32>
    tpu.vector_store %arg5[%c0_8, %c0_9, %c0_10], %7 {strides = array<i32>} : memref<2x64x128xf32, #tpu.memory_space<vmem>>, vector<2x64x128xf32>,
    %c0_i32_11 = arith.constant 0 : i32
    %9 = arith.cmpi eq, %arg2, %c0_i32_11 : i32
    %10 = arith.extui %9 : i1 to i32
    %c0_i32_12 = arith.constant 0 : i32
    %11 = arith.cmpi ne, %10, %c0_i32_12 : i32
    scf.if %11 {
      %c0_13 = arith.constant 0 : index
      %c0_14 = arith.constant 0 : index
      %c0_15 = arith.constant 0 : index
      %12 = vector.load %arg5[%c0_13, %c0_14, %c0_15] : memref<2x64x128xf32, #tpu.memory_space<vmem>>, vector<2x64x128xf32>
      %cst = arith.constant dense<0.000000e+00> : vector<2x64xf32>
      %13 = vector.multi_reduction <add>, %12, %cst [2] : vector<2x64x128xf32> to vector<2x64xf32>
      %c0_16 = arith.constant 0 : index
      %c0_17 = arith.constant 0 : index
      %c0_18 = arith.constant 0 : index
      %14 = vector.load %arg4[%c0_16, %c0_17, %c0_18] : memref<1x2x64xf32, #tpu.memory_space<vmem>>, vector<1x2x64xf32>
      %15 = vector.shape_cast %14 : vector<1x2x64xf32> to vector<2x64xf32>
      %16 = vector.shape_cast %13 : vector<2x64xf32> to vector<1x2x64xf32>
      tpu.vector_store %arg4[%c0_16, %c0_17, %c0_18], %16 {strides = array<i32>} : memref<1x2x64xf32, #tpu.memory_space<vmem>>, vector<1x2x64xf32>,
    } else {
    }
    return
  }
  func.func @transform_0(%arg0: i32, %arg1: i32, %arg2: i32) -> (i32, i32, i32) {
    %c1_i32 = arith.constant 1 : i32
    %0 = arith.muli %arg0, %c1_i32 : i32
    %1 = arith.addi %0, %arg2 : i32
    %c0_i32 = arith.constant 0 : i32
    %2 = arith.minsi %1, %c0_i32 : i32
    %c0_i32_0 = arith.constant 0 : i32
    %c0_i32_1 = arith.constant 0 : i32
    return %arg1, %c0_i32_0, %2 : i32, i32, i32
  }
  func.func @transform_1(%arg0: i32, %arg1: i32, %arg2: i32) -> (i32, i32, i32) {
    %c0_i32 = arith.constant 0 : i32
    %c0_i32_0 = arith.constant 0 : i32
    return %arg0, %arg1, %c0_i32 : i32, i32, i32
  }
}

</mosaic_0001>

<bundles_post_ra>
// kernel: tpu_custom_call.1
= control target key start
LH: loop header
LB: loop body
LE: loop exit
PB: predicated region body
PF: predicated region fallthrough
CT: control target
= control target key end

     0   :  { %6 = vsyncpa [#allocation4], 0  ;;  %s434_s0 = inlined_call_operand.hbm [shape: f32[2,64,256], index: 0, kind: input, shape index: {}]   ;;  %s435_s1 = inlined_call_operand.hbm [shape: f32[1,2,64], index: 1, kind: output, shape index: {}]  }
   0x1   :  { %7 = vsyncpa [#allocation5], 0  ;;  %s384_s6 = smov [#allocation3]   ;;  %s336_s10 = scalar_lea.hbm %s434_s0, 4096 }
   0x2   :  { %s19_s7 = sshll.u32 %s384_s6, 4  ;;  %p337_p0 = scmp.ne.s32.totalorder %s434_s0, %s336_s10  ;;  %s20_s7 = int_to_ptr.vmem [resolvable:$true] %s19_s7 }
   0x3   :  { %p340_p1 = scmp.lt.u32.totalorder %s336_s10, %s434_s0 }
   0x5   :  { %p342_p2 = pnand %p340_p1, %p337_p0 }
   0x7   :  { %345 = shalt.err (!%p342_p2)
}
   0x8   :  { %s346_s15 = scalar_lea.vmem %s20_s7, 4096  ;;  %p351_p4 = scmp.lt.s32.totalorder %s20_s7, %s20_s7 }
   0x9   :  { %p347_p3 = scmp.ne.s32.totalorder %s20_s7, %s346_s15  ;;  %p352_p5 = scmp.lt.s32.totalorder %s346_s15, %s346_s15 }
   0xb   :  { %p353_p6 = por %p352_p5, %p351_p4 }
   0xd   :  { %p354_p7 = pnand %p353_p6, %p347_p3 }
   0xf   :  { %357 = shalt.err (!%p354_p7)
}
  0x10   :  { %s385_s16 = smov 256   ;;  %s386_s17 = smov 16  }
  0x11   :  { %25 = dma.hbm_to_vmem [thread:$0]  %s434_s0, 4096, %s20_s7, [#allocation4], %s385_s16, %s385_s16, %s386_s17  }
  0x12   :  { %380 = dma.done.wait [#allocation4], 4096  }
  0x13   :  { %381 = vsyncadd [#allocation4], 4294963200  ;;  %v77_v0 = vld [vmem:[#allocation3 + $0x80] sm:$0xff]  ;;  %v109_v1 = vld [vmem:[#allocation3 + $0x88] sm:$0xff]  ;;  %v216_v52 = vlaneseq  ;;  %vm227_vm0 = vcmask 130112   ;;  %vm234_vm1 = vcmask 195712  }
  0x14   :  { %v69_v2 = vld [vmem:[#allocation3] sm:$0xff]  ;;  %v125_v3 = vadd.f32 %v109_v1, %v77_v0  ;;  %v101_v4 = vld [vmem:[#allocation3 + $0x8] sm:$0xff]  ;;  %v78_v5 = vld [vmem:[#allocation3 + $0x90] sm:$0xff]  ;;  %vm241_vm2 = vcmask 261312   ;;  %vm248_vm3 = vcmask 326912   ;;  %vm255_vm4 = vcmask 392512  }
  0x15   :  { %v110_v6 = vld [vmem:[#allocation3 + $0x98] sm:$0xff]  ;;  %v117_v7 = vadd.f32 %v101_v4, %v69_v2  ;;  %v70_v8 = vld [vmem:[#allocation3 + $0x10] sm:$0xff]  ;;  %v79_v12 = vld [vmem:[#allocation3 + $0xa0] sm:$0xff]  ;;  %v217_v55 = vand.u32 127, %v216_v52  ;;  %v219_v60 = vshrl.u32 %v216_v52, 7  ;;  %vm262_vm5 = vcmask 458112  }
  0x16   :  { %v102_v9 = vld [vmem:[#allocation3 + $0x18] sm:$0xff]  ;;  %184 = vadd.xlane.f32.xlu1 %v125_v3  ;;  %v126_v10 = vadd.f32 %v110_v6, %v78_v5  ;;  %v111_v13 = vld [vmem:[#allocation3 + $0xa8] sm:$0xff]  ;;  %v71_v14 = vld [vmem:[#allocation3 + $0x20] sm:$0xff]  ;;  %vm269_vm6 = vcmask 523712   ;;  %s387_s0 = smov [#allocation6]   ;;  %vm310_vm7 = vcmask 1041409  }
  0x17   :  { %168 = vadd.xlane.f32.xlu0 %v117_v7  ;;  %v118_v11 = vadd.f32 %v102_v9, %v70_v8  ;;  %v103_v15 = vld [vmem:[#allocation3 + $0x28] sm:$0xff]  ;;  %v127_v16 = vadd.f32 %v111_v13, %v79_v12  ;;  %v80_v18 = vld [vmem:[#allocation3 + $0xb0] sm:$0xff]  ;;  %v112_v19 = vld [vmem:[#allocation3 + $0xb8] sm:$0xff]  ;;  %v222_v57 = vadd.s32 4294967288, %v217_v55  ;;  %v229_v59 = vadd.s32 4294967280, %v217_v55  ;;  %s321_s20 = sshll.u32 %s387_s0, 4  ;;  %s322_s20 = int_to_ptr.vmem [resolvable:$true] %s321_s20 }
  0x18   :  { %v119_v17 = vadd.f32 %v103_v15, %v71_v14  ;;  %v72_v20 = vld [vmem:[#allocation3 + $0x30] sm:$0xff]  ;;  %v104_v21 = vld [vmem:[#allocation3 + $0x38] sm:$0xff]  ;;  %v128_v22 = vadd.f32 %v112_v19, %v80_v18  ;;  %v81_v24 = vld [vmem:[#allocation3 + $0xc0] sm:$0xff]  ;;  %v236_v61 = vadd.s32 4294967272, %v217_v55  ;;  %v243_v62 = vadd.s32 4294967264, %v217_v55  ;;  %s358_s21 = scalar_lea.vmem %s322_s20, 32  ;;  %p363_p9 = scmp.lt.s32.totalorder %s322_s20, %s322_s20 }
  0x19   :  { %v120_v23 = vadd.f32 %v104_v21, %v72_v20  ;;  %v113_v25 = vld [vmem:[#allocation3 + $0xc8] sm:$0xff]  ;;  %v73_v26 = vld [vmem:[#allocation3 + $0x40] sm:$0xff]  ;;  %v82_v30 = vld [vmem:[#allocation3 + $0xd0] sm:$0xff]  ;;  %v225_v0 = vsub.s32 %v222_v57, %v219_v60  ;;  %v250_v2 = vadd.s32 4294967256, %v217_v55  ;;  %v232_v3 = vsub.s32 %v229_v59, %v219_v60  ;;  %p359_p8 = scmp.ne.s32.totalorder %s322_s20, %s358_s21  ;;  %p364_p10 = scmp.lt.s32.totalorder %s358_s21, %s358_s21 }
  0x1a   :  { %186 = vadd.xlane.f32.xlu1 %v126_v10  ;;  %v105_v27 = vld [vmem:[#allocation3 + $0x48] sm:$0xff]  ;;  %v129_v28 = vadd.f32 %v113_v25, %v81_v24  ;;  %v114_v31 = vld [vmem:[#allocation3 + $0xd8] sm:$0xff]  ;;  %v74_v32 = vld [vmem:[#allocation3 + $0x50] sm:$0xff]  ;;  %v257_v4 = vadd.s32 4294967248, %v217_v55  ;;  %v220_v5 = vsub.s32 %v217_v55, %v219_v60  ;;  %v239_v6 = vsub.s32 %v236_v61, %v219_v60 }
  0x1b   :  { %170 = vadd.xlane.f32.xlu0 %v118_v11  ;;  %v121_v29 = vadd.f32 %v105_v27, %v73_v26  ;;  %v106_v33 = vld [vmem:[#allocation3 + $0x58] sm:$0xff]  ;;  %v130_v34 = vadd.f32 %v114_v31, %v82_v30  ;;  %v83_v36 = vld [vmem:[#allocation3 + $0xe0] sm:$0xff]  ;;  %v115_v37 = vld [vmem:[#allocation3 + $0xe8] sm:$0xff]  ;;  %v246_v7 = vsub.s32 %v243_v62, %v219_v60  ;;  %v253_v10 = vsub.s32 %v250_v2, %v219_v60  ;;  %p365_p11 = por %p364_p10, %p363_p9 }
  0x1c   :  { %v122_v35 = vadd.f32 %v106_v33, %v74_v32  ;;  %v75_v38 = vld [vmem:[#allocation3 + $0x60] sm:$0xff]  ;;  %v107_v39 = vld [vmem:[#allocation3 + $0x68] sm:$0xff]  ;;  %v131_v40 = vadd.f32 %v115_v37, %v83_v36  ;;  %v84_v42 = vld [vmem:[#allocation3 + $0xf0] sm:$0xff]  ;;  %v264_v12 = vadd.s32 4294967240, %v217_v55  ;;  %v260_v15 = vsub.s32 %v257_v4, %v219_v60 }
  0x1d   :  { %v123_v41 = vadd.f32 %v107_v39, %v75_v38  ;;  %v116_v43 = vld [vmem:[#allocation3 + $0xf8] sm:$0xff]  ;;  %v76_v44 = vld [vmem:[#allocation3 + $0x70] sm:$0xff]  ;;  %vm313_vm8 = vcmask 517120   ;;  %p366_p12 = pnand %p365_p11, %p359_p8 }
  0x1e   :  { %188 = vadd.xlane.f32.xlu1 %v127_v16  ;;  %v108_v45 = vld [vmem:[#allocation3 + $0x78] sm:$0xff]  ;;  %v132_v46 = vadd.f32 %v116_v43, %v84_v42  ;;  %v267_v27 = vsub.s32 %v264_v12, %v219_v60 }
  0x1f   :  { %172 = vadd.xlane.f32.xlu0 %v119_v17  ;;  %v124_v47 = vadd.f32 %v108_v45, %v76_v44 }
  0x22   :  { %190 = vadd.xlane.f32.xlu1 %v128_v22 }
  0x23   :  { %174 = vadd.xlane.f32.xlu0 %v120_v23 }
  0x26   :  { %192 = vadd.xlane.f32.xlu1 %v129_v28 }
  0x27   :  { %176 = vadd.xlane.f32.xlu0 %v121_v29 }
  0x2a   :  { %194 = vadd.xlane.f32.xlu1 %v130_v34 }
  0x2b   :  { %178 = vadd.xlane.f32.xlu0 %v122_v35 }
  0x2e   :  { %196 = vadd.xlane.f32.xlu1 %v131_v40 }
  0x2f   :  { %180 = vadd.xlane.f32.xlu0 %v123_v41 }
  0x32   :  { %198 = vadd.xlane.f32.xlu1 %v132_v46 }
  0x33   :  { %182 = vadd.xlane.f32.xlu0 %v124_v47 }
  0xa3   :  { %v185_v48 = vpop.xlane.xlu1 %184 }
  0xa4   :  { %v169_v49 = vpop.xlane.xlu0 %168  ;;  %v274_v16 = vrot.slane %v185_v48, %v220_v5 }
  0xa5   :  { %v221_v19 = vrot.slane %v169_v49, %v220_v5 }
  0xa7   :  { %v187_v50 = vpop.xlane.xlu1 %186 }
  0xa8   :  { %v171_v51 = vpop.xlane.xlu0 %170  ;;  %v278_v9 = vrot.slane %v187_v50, %v225_v0 }
  0xa9   :  { %v226_v13 = vrot.slane %v171_v51, %v225_v0 }
  0xaa   :  { %v279_v23 = vsel %vm227_vm0, %v278_v9, %v274_v16 }
  0xab   :  { %v189_v53 = vpop.xlane.xlu1 %188  ;;  %v228_v28 = vsel %vm227_vm0, %v226_v13, %v221_v19 }
  0xac   :  { %v173_v54 = vpop.xlane.xlu0 %172  ;;  %v283_v14 = vrot.slane %v189_v53, %v232_v3 }
  0xad   :  { %v233_v17 = vrot.slane %v173_v54, %v232_v3 }
  0xae   :  { %v284_v29 = vsel %vm234_vm1, %v283_v14, %v279_v23 }
  0xaf   :  { %v191_v56 = vpop.xlane.xlu1 %190  ;;  %v235_v32 = vsel %vm234_vm1, %v233_v17, %v228_v28 }
  0xb0   :  { %v175_v58 = vpop.xlane.xlu0 %174  ;;  %v288_v18 = vrot.slane %v191_v56, %v239_v6 }
  0xb1   :  { %v240_v20 = vrot.slane %v175_v58, %v239_v6 }
  0xb2   :  { %v289_v33 = vsel %vm241_vm2, %v288_v18, %v284_v29 }
  0xb3   :  { %v193_v63 = vpop.xlane.xlu1 %192  ;;  %v242_v35 = vsel %vm241_vm2, %v240_v20, %v235_v32 }
  0xb4   :  { %v177_v1 = vpop.xlane.xlu0 %176  ;;  %v293_v21 = vrot.slane %v193_v63, %v246_v7 }
  0xb5   :  { %v247_v24 = vrot.slane %v177_v1, %v246_v7 }
  0xb6   :  { %v294_v36 = vsel %vm248_vm3, %v293_v21, %v289_v33 }
  0xb7   :  { %v195_v8 = vpop.xlane.xlu1 %194  ;;  %v249_v38 = vsel %vm248_vm3, %v247_v24, %v242_v35 }
  0xb8   :  { %v179_v11 = vpop.xlane.xlu0 %178  ;;  %v298_v25 = vrot.slane %v195_v8, %v253_v10 }
  0xb9   :  { %v254_v30 = vrot.slane %v179_v11, %v253_v10 }
  0xba   :  { %v299_v39 = vsel %vm255_vm4, %v298_v25, %v294_v36 }
  0xbb   :  { %v197_v22 = vpop.xlane.xlu1 %196  ;;  %v256_v42 = vsel %vm255_vm4, %v254_v30, %v249_v38 }
  0xbc   :  { %v181_v26 = vpop.xlane.xlu0 %180  ;;  %v303_v31 = vrot.slane %v197_v22, %v260_v15 }
  0xbd   :  { %v261_v34 = vrot.slane %v181_v26, %v260_v15 }
  0xbe   :  { %v304_v43 = vsel %vm262_vm5, %v303_v31, %v299_v39 }
  0xbf   :  { %v199_v37 = vpop.xlane.xlu1 %198  ;;  %v263_v45 = vsel %vm262_vm5, %v261_v34, %v256_v42 }
  0xc0   :  { %v308_v40 = vrot.slane %v199_v37, %v267_v27  ;;  %v183_v41 = vpop.xlane.xlu0 %182 }
  0xc1   :  { %v268_v44 = vrot.slane %v183_v41, %v267_v27 }
  0xc2   :  { %v309_v46 = vsel %vm269_vm6, %v308_v40, %v304_v43 }
  0xc3   :  { %v270_v47 = vsel %vm269_vm6, %v268_v44, %v263_v45 }
  0xc4   :  { %v311_v48 = vsel %vm310_vm7, %v309_v46, %v270_v47 }
  0xc5   :  { %314 = vst.msk [vmem:[#allocation6] sm:$0x3] %vm313_vm8, %v311_v48 }
  0xc6   :  { %369 = shalt.err (!%p366_p12)
}
  0xc7   :  { %s370_s24 = scalar_lea.hbm %s435_s1, 32 }
  0xc8   :  { %p371_p13 = scmp.ne.s32.totalorder %s435_s1, %s370_s24  ;;  %p374_p0 = scmp.lt.u32.totalorder %s370_s24, %s435_s1 }
  0xca   :  { %p376_p1 = pnand %p374_p0, %p371_p13 }
  0xcc   :  { %379 = shalt.err (!%p376_p1)
}
  0xcd   :  { %324 = dma.vmem_to_hbm [thread:$0]  %s322_s20, 32, %s435_s1, [#allocation5]  }
  0xce   :  { %382 = dma.done.wait [#allocation5], 32  }
  0xcf   :  { %383 = vsyncadd [#allocation5], 4294967264 }
  0xd0   :  { %328 = vsyncpa [#allocation4], 1 }
  0xd1   :  { %329 = vsyncpa [#allocation5], 1 }

</bundles_post_ra>
